<compile_context>
chip_gen: v7x
topology: tpu7x:2x2x1
jax: 0.10.0
libtpu: 0.0.40
codegen_flags: <defaults>
</compile_context>

<pallas_src>
import functools

import jax
import jax.numpy as jnp
from jax.experimental import pallas as pl
from jax.experimental.pallas import tpu as pltpu


def _round_up(x, m):
    return ((x + m - 1) // m) * m


def fasttext_kernel(ids_ref, emb_ref, w_ref, b_ref, out_ref, acc_ref,
                    *, tb, seq_len, e_pad, inv_len):
    """One grid step = one block of TB batch rows.

    ids_ref : [B_pad*L] int32 in SMEM (scalar prefetch)
    emb_ref : [V_pad, E_pad]        VMEM-resident (padded) embedding table
    w_ref   : [E_pad, label_pad]    pre-transposed, pre-padded Linear weight
    b_ref   : [1, label_pad]        padded Linear bias
    out_ref : [TB, label_pad]       logits for this batch block
    acc_ref : [TB, E_pad] f32       pooled (summed) embeddings scratch
    """
    blk = pl.program_id(0)
    base = blk * tb * seq_len

    # ---- Gather + sequence-sum: table rows are read straight out of VMEM ----
    def body_row(b_local, _):
        def body_tok(l, row_acc):
            tok = ids_ref[base + b_local * seq_len + l]
            return row_acc + emb_ref[pl.ds(tok, 1), :].astype(jnp.float32)

        row_sum = jax.lax.fori_loop(
            0, seq_len, body_tok, jnp.zeros((1, e_pad), jnp.float32))
        acc_ref[pl.ds(b_local, 1), :] = row_sum
        return 0

    jax.lax.fori_loop(0, tb, body_row, 0)

    # ---- Mean over the sequence + batched Linear on the MXU ----
    pooled = acc_ref[...] * inv_len                       # [TB, E_pad]
    logits = jax.lax.dot_general(                         # [TB, E_pad] @ [E_pad, Lp]
        pooled, w_ref[...],
        dimension_numbers=(((1,), (0,)), ((), ())),
        preferred_element_type=jnp.float32)
    out_ref[...] = (logits + b_ref[...]).astype(out_ref.dtype)


def prepare_fasttext_params(embedding, weight, bias):
    """Pad / transpose the parameters ONCE, outside the hot path."""
    V, E = embedding.shape
    label = weight.shape[0]

    e_pad = max(128, _round_up(E, 128))
    label_pad = max(128, _round_up(label, 128))
    v_pad = _round_up(V, 8)

    emb_pad = jnp.zeros((v_pad, e_pad), embedding.dtype).at[:V, :E].set(embedding)
    # Present W as [E_pad, label_pad]: plain ((1,),(0,)) contraction in-kernel.
    w_t_pad = jnp.zeros((e_pad, label_pad), weight.dtype).at[:E, :label].set(weight.T)
    b_pad = jnp.zeros((1, label_pad), bias.dtype).at[0, :label].set(bias)

    return {
        "emb": emb_pad, "w_t": w_t_pad, "b": b_pad,
        "V": V, "E": E, "label": label,
        "v_pad": v_pad, "e_pad": e_pad, "label_pad": label_pad,
    }


def fasttext_forward(ids, params):
    """ids: [B, L] int32; params: output of prepare_fasttext_params."""
    B, L = ids.shape
    V = params["V"]
    label = params["label"]
    v_pad, e_pad, label_pad = params["v_pad"], params["e_pad"], params["label_pad"]
    emb_pad, w_t_pad, b_pad = params["emb"], params["w_t"], params["b"]

    # NOTE: AvgPool1d(kernel_size=max_length).squeeze(-1) equals a plain mean
    # over the sequence only when L == max_length (as the module assumes).

    # Batch-block size: sublane-aligned, capped at 256 (MXU-friendly M tile).
    tb = min(256, _round_up(B, 8))
    b_pad_rows = _round_up(B, tb)
    n_blocks = b_pad_rows // tb

    # Clamp ids (nn.Embedding would raise; here it keeps the gather in-bounds)
    # and pad extra batch rows with token 0; their outputs are sliced off.
    ids_safe = jnp.clip(ids.astype(jnp.int32), 0, V - 1)
    ids_full = jnp.zeros((b_pad_rows, L), jnp.int32).at[:B, :].set(ids_safe)
    ids_flat = ids_full.reshape(-1)

    kernel = functools.partial(
        fasttext_kernel, tb=tb, seq_len=L, e_pad=e_pad, inv_len=1.0 / L)

    grid_spec = pltpu.PrefetchScalarGridSpec(
        num_scalar_prefetch=1,
        grid=(n_blocks,),
        in_specs=[
            pl.BlockSpec((v_pad, e_pad), lambda i, ids: (0, 0)),       # table (resident)
            pl.BlockSpec((e_pad, label_pad), lambda i, ids: (0, 0)),   # W^T   (resident)
            pl.BlockSpec((1, label_pad), lambda i, ids: (0, 0)),       # bias
        ],
        out_specs=pl.BlockSpec((tb, label_pad), lambda i, ids: (i, 0)),
        scratch_shapes=[pltpu.VMEM((tb, e_pad), jnp.float32)],
    )

    # Rough VMEM budget (double-buffered inputs + out block + scratch) + margin.
    itemsize = jnp.dtype(emb_pad.dtype).itemsize
    budget = (2 * (v_pad * e_pad * itemsize
                   + e_pad * label_pad * itemsize
                   + label_pad * itemsize)
              + 2 * tb * label_pad * 4
              + tb * e_pad * 4)
    vmem_limit = min(100 * 1024 * 1024, max(32 * 1024 * 1024, int(budget * 1.5)))

    out_padded = pl.pallas_call(
        kernel,
        out_shape=jax.ShapeDtypeStruct((b_pad_rows, label_pad), jnp.float32),
        grid_spec=grid_spec,
        compiler_params=pltpu.CompilerParams(
            # Batch blocks are independent -> megacore-parallel on v7x.
            dimension_semantics=("parallel",),
            vmem_limit_bytes=vmem_limit,
        ),
    )(ids_flat, emb_pad, w_t_pad, b_pad)

    return out_padded[:B, :label]


def reference_forward(ids, embedding, weight, bias):
    emb = jnp.take(embedding, ids, axis=0)          # [B, L, E]
    pooled = emb.mean(axis=1)                       # [B, E]
    return pooled @ weight.T + bias                 # [B, label]


if __name__ == "__main__":
    # Small shapes consistent with the module.
    vocab_size = 32
    embed_dim = 32
    max_length = 8       # seq length must equal max_length (AvgPool1d kernel_size)
    label_size = 8
    batch = 2

    key = jax.random.PRNGKey(0)
    k_ids, k_emb, k_w, k_b = jax.random.split(key, 4)

    ids = jax.random.randint(k_ids, (batch, max_length), 0, vocab_size, dtype=jnp.int32)
    embedding = jax.random.normal(k_emb, (vocab_size, embed_dim), dtype=jnp.float32)
    weight = jax.random.normal(k_w, (label_size, embed_dim), dtype=jnp.float32) * 0.1
    bias = jax.random.normal(k_b, (label_size,), dtype=jnp.float32) * 0.1

    params = prepare_fasttext_params(embedding, weight, bias)   # padded once
    logits = fasttext_forward(ids, params)
    logits = jax.block_until_ready(logits)

    ref = reference_forward(ids, embedding, weight, bias)
    assert logits.shape == (batch, label_size)
    assert jnp.allclose(logits, ref, atol=1e-5, rtol=1e-5), "mismatch vs reference"

    print("KERNEL_OK")
</pallas_src>

<mosaic_0001>
module attributes {stable_mosaic.version = 11 : i64} {
  func.func @fasttext_kernel(%arg0: i32, %arg1: memref<64xi32, #tpu.memory_space<smem>>, %arg2: memref<32x128xf32, #tpu.memory_space<vmem>>, %arg3: memref<128x128xf32, #tpu.memory_space<vmem>>, %arg4: memref<1x128xf32, #tpu.memory_space<vmem>>, %arg5: memref<8x128xf32, #tpu.memory_space<vmem>>, %arg6: memref<8x128xf32, #tpu.memory_space<vmem>>) attributes {dimension_semantics = [#tpu.dimension_semantics<parallel>], iteration_bounds = array<i64: 1>, scalar_prefetch = 1 : i64, scratch_operands = 1 : i64, tpu.core_type = #tpu.core_type<tc>, window_params = [{pipeline_mode = #tpu.pipeline_mode<synchronous>, transform_indices = @transform_0, window_bounds = array<i64: 32, 128>}, {pipeline_mode = #tpu.pipeline_mode<synchronous>, transform_indices = @transform_1, window_bounds = array<i64: 128, 128>}, {pipeline_mode = #tpu.pipeline_mode<synchronous>, transform_indices = @transform_2, window_bounds = array<i64: 1, 128>}, {transform_indices = @transform_3, window_bounds = array<i64: 8, 128>}]} {
    %c8_i32 = arith.constant 8 : i32
    %0 = arith.muli %arg0, %c8_i32 : i32
    %c8_i32_0 = arith.constant 8 : i32
    %1 = arith.muli %0, %c8_i32_0 : i32
    %c0_i32 = arith.constant 0 : i32
    %c8_i32_1 = arith.constant 8 : i32
    %2 = arith.addi %c0_i32, %c8_i32_1 : i32
    %c1_i32 = arith.constant 1 : i32
    scf.for %arg7 = %c0_i32 to %2 step %c1_i32  : i32 {
      %cst_11 = arith.constant 0.000000e+00 : f32
      %12 = vector.broadcast %cst_11 : f32 to vector<1x128xf32>
      %c0_i32_12 = arith.constant 0 : i32
      %c8_i32_13 = arith.constant 8 : i32
      %13 = arith.addi %c0_i32_12, %c8_i32_13 : i32
      %c1_i32_14 = arith.constant 1 : i32
      %14 = scf.for %arg8 = %c0_i32_12 to %13 step %c1_i32_14 iter_args(%arg9 = %12) -> (vector<1x128xf32>)  : i32 {
        %c8_i32_17 = arith.constant 8 : i32
        %17 = arith.muli %arg7, %c8_i32_17 : i32
        %18 = arith.addi %1, %17 : i32
        %19 = arith.addi %18, %arg8 : i32
        %20 = arith.index_cast %19 : i32 to index
        %21 = memref.load %arg1[%20] : memref<64xi32, #tpu.memory_space<smem>>
        %22 = arith.index_cast %21 : i32 to index
        %c0_18 = arith.constant 0 : index
        %23 = vector.load %arg2[%22, %c0_18] : memref<32x128xf32, #tpu.memory_space<vmem>>, vector<1x128xf32>
        %24 = arith.addf %arg9, %23 : vector<1x128xf32>
        scf.yield %24 : vector<1x128xf32>
      }
      %c8_i32_15 = arith.constant 8 : i32
      %15 = arith.index_cast %arg7 : i32 to index
      %c0_16 = arith.constant 0 : index
      %16 = vector.load %arg6[%15, %c0_16] : memref<8x128xf32, #tpu.memory_space<vmem>>, vector<1x128xf32>
      tpu.vector_store %arg6[%15, %c0_16], %14 {strides = array<i32>} : memref<8x128xf32, #tpu.memory_space<vmem>>, vector<1x128xf32>,
    }
    %c8_i32_2 = arith.constant 8 : i32
    %c0 = arith.constant 0 : index
    %c0_3 = arith.constant 0 : index
    %3 = vector.load %arg6[%c0, %c0_3] : memref<8x128xf32, #tpu.memory_space<vmem>>, vector<8x128xf32>
    %cst = arith.constant 1.250000e-01 : f32
    %4 = vector.broadcast %cst : f32 to vector<8x128xf32>
    %5 = arith.mulf %3, %4 : vector<8x128xf32>
    %c0_4 = arith.constant 0 : index
    %c0_5 = arith.constant 0 : index
    %6 = vector.load %arg3[%c0_4, %c0_5] : memref<128x128xf32, #tpu.memory_space<vmem>>, vector<128x128xf32>
    %cst_6 = arith.constant dense<0.000000e+00> : vector<8x128xf32>
    %7 = tpu.matmul %5, %6, %cst_6 {dimension_numbers = #tpu.dot_dimension_numbers<[1], [0], [0], [1], [0, 0, 1, 1], [], []>} : vector<8x128xf32>, vector<128x128xf32>, vector<8x128xf32> -> vector<8x128xf32>
    %c0_7 = arith.constant 0 : index
    %c0_8 = arith.constant 0 : index
    %8 = vector.load %arg4[%c0_7, %c0_8] : memref<1x128xf32, #tpu.memory_space<vmem>>, vector<1x128xf32>
    %9 = vector.broadcast %8 : vector<1x128xf32> to vector<8x128xf32>
    %10 = arith.addf %7, %9 : vector<8x128xf32>
    %c0_9 = arith.constant 0 : index
    %c0_10 = arith.constant 0 : index
    %11 = vector.load %arg5[%c0_9, %c0_10] : memref<8x128xf32, #tpu.memory_space<vmem>>, vector<8x128xf32>
    tpu.vector_store %arg5[%c0_9, %c0_10], %10 {strides = array<i32>} : memref<8x128xf32, #tpu.memory_space<vmem>>, vector<8x128xf32>,
    return
  }
  func.func @transform_0(%arg0: i32, %arg1: memref<64xi32, #tpu.memory_space<smem>>) -> (i32, i32) {
    %c0_i32 = arith.constant 0 : i32
    %c0_i32_0 = arith.constant 0 : i32
    %c0_i32_1 = arith.constant 0 : i32
    return %c0_i32, %c0_i32_0 : i32, i32
  }
  func.func @transform_1(%arg0: i32, %arg1: memref<64xi32, #tpu.memory_space<smem>>) -> (i32, i32) {
    %c0_i32 = arith.constant 0 : i32
    %c0_i32_0 = arith.constant 0 : i32
    %c0_i32_1 = arith.constant 0 : i32
    return %c0_i32, %c0_i32_0 : i32, i32
  }
  func.func @transform_2(%arg0: i32, %arg1: memref<64xi32, #tpu.memory_space<smem>>) -> (i32, i32) {
    %c0_i32 = arith.constant 0 : i32
    %c0_i32_0 = arith.constant 0 : i32
    %c0_i32_1 = arith.constant 0 : i32
    return %c0_i32, %c0_i32_0 : i32, i32
  }
  func.func @transform_3(%arg0: i32, %arg1: memref<64xi32, #tpu.memory_space<smem>>) -> (i32, i32) {
    %c0_i32 = arith.constant 0 : i32
    %c0_i32_0 = arith.constant 0 : i32
    return %arg0, %c0_i32 : i32, i32
  }
}

</mosaic_0001>

<bundles_post_ra>
// kernel: tpu_custom_call.1
= control target key start
LH: loop header
LB: loop body
LE: loop exit
PB: predicated region body
PF: predicated region fallthrough
CT: control target
= control target key end

     0   :  { %s502_s0 = inlined_call_operand.hbm [shape: s32[64], index: 0, kind: input, shape index: {}]   ;;  %s503_s1 = inlined_call_operand.hbm [shape: f32[32,128], index: 1, kind: input, shape index: {}]   ;;  %s504_s2 = inlined_call_operand.hbm [shape: f32[128,128], index: 2, kind: input, shape index: {}]   ;;  %s505_s3 = inlined_call_operand.vmem [shape: f32[1,128], index: 3, kind: input, shape index: {}]   ;;  %s506_s4 = inlined_call_operand.hbm [shape: f32[8,128], index: 4, kind: output, shape index: {}]  }
   0x1   :  { %s309_s17 = scalar_lea.hbm %s502_s0, 16 }
   0x2   :  { %p310_p0 = scmp.ne.s32.totalorder %s502_s0, %s309_s17  ;;  %p313_p1 = scmp.lt.u32.totalorder %s309_s17, %s502_s0 }
   0x4   :  { %p315_p2 = pnand %p313_p1, %p310_p0 }
   0x6   :  { %318 = shalt.err (!%p315_p2)  }
   0x7   :  { %s417_s22 = smov [#allocation4]  }
   0x8   :  { %10 = dma.hbm_to_smem %s502_s0, 16, %s417_s22, [#allocation3] }
   0x9   :  { %397 = dma.done.wait [#allocation3], 16 }
   0xa   :  { %398 = vsyncadd [#allocation3], 4294967280 }
   0xb   :  { %12 = sfence }
   0xc   :  { %13 = vsyncpa [#allocation6], 0 }
   0xd   :  { %14 = vsyncpa [#allocation9], 0 }
   0xe   :  { %15 = vsyncpa [#allocation7], 0  ;;  %s418_s25 = smov [#allocation5]   ;;  %s319_s29 = scalar_lea.hbm %s503_s1, 512 }
   0xf   :  { %s21_s26 = sshll.u32 %s418_s25, 4  ;;  %p320_p3 = scmp.ne.s32.totalorder %s503_s1, %s319_s29  ;;  %s22_s26 = int_to_ptr.vmem [resolvable:$true] %s21_s26 }
  0x10   :  { %p323_p4 = scmp.lt.u32.totalorder %s319_s29, %s503_s1 }
  0x12   :  { %p325_p5 = pnand %p323_p4, %p320_p3 }
  0x14   :  { %328 = shalt.err (!%p325_p5)
}
  0x15   :  { %s329_s0 = scalar_lea.vmem %s22_s26, 512  ;;  %p334_p7 = scmp.lt.s32.totalorder %s22_s26, %s22_s26 }
  0x16   :  { %p330_p6 = scmp.ne.s32.totalorder %s22_s26, %s329_s0  ;;  %p335_p8 = scmp.lt.s32.totalorder %s329_s0, %s329_s0 }
  0x18   :  { %p336_p9 = por %p335_p8, %p334_p7 }
  0x1a   :  { %p337_p10 = pnand %p336_p9, %p330_p6 }
  0x1c   :  { %340 = shalt.err (!%p337_p10)
}
  0x1d   :  { %s419_s8 = smov 128   ;;  %s420_s9 = smov 8  }
  0x1e   :  { %27 = dma.hbm_to_vmem [thread:$0]  %s503_s1, 512, %s22_s26, [#allocation6], %s419_s8, %s419_s8, %s420_s9  }
  0x1f   :  { %s421_s12 = smov [#allocation8]   ;;  %s341_s16 = scalar_lea.hbm %s504_s2, 2048 }
  0x20   :  { %s33_s13 = sshll.u32 %s421_s12, 4  ;;  %p342_p11 = scmp.ne.s32.totalorder %s504_s2, %s341_s16  ;;  %s34_s13 = int_to_ptr.vmem [resolvable:$true] %s33_s13 }
  0x21   :  { %p345_p12 = scmp.lt.u32.totalorder %s341_s16, %s504_s2 }
  0x23   :  { %p347_p13 = pnand %p345_p12, %p342_p11 }
  0x25   :  { %350 = shalt.err (!%p347_p13)
}
  0x26   :  { %s351_s21 = scalar_lea.vmem %s34_s13, 2048  ;;  %p356_p1 = scmp.lt.s32.totalorder %s34_s13, %s34_s13 }
  0x27   :  { %p352_p0 = scmp.ne.s32.totalorder %s34_s13, %s351_s21  ;;  %p357_p2 = scmp.lt.s32.totalorder %s351_s21, %s351_s21 }
  0x29   :  { %p358_p3 = por %p357_p2, %p356_p1 }
  0x2b   :  { %p359_p4 = pnand %p358_p3, %p352_p0 }
  0x2d   :  { %362 = shalt.err (!%p359_p4)
}
  0x2e   :  { %39 = dma.hbm_to_vmem [thread:$0]  %s504_s2, 2048, %s34_s13, [#allocation9], %s419_s8, %s419_s8, %s420_s9  }
  0x2f   :  { %399 = dma.done.wait [#allocation6], 512  }
  0x30   :  { %400 = vsyncadd [#allocation6], 4294966784 }
  0x31   :  { %401 = dma.done.wait [#allocation9], 2048  }
  0x32   :  { %402 = vsyncadd [#allocation9], 4294965248  ;;  %s405_s23 = smov 0  }
  0x33 LB: > { %v409_v0 = vmov 0.0   ;;  %s413_s24 = smov 0   ;;  %s407_s23 = sphi %s405_s23, %s54_s23  }
  0x34 LB: >> { %s198_s25 = sshll.u32 %s407_s23, 3  ;;  %s415_s24 = sphi %s413_s24, %s60_s24   ;;  %v411_v0 = vphi %v409_v0, %v410_v0  }
  0x35   : >> { %s64_s26 = sadd.s32 %s415_s24, %s198_s25  ;;  %s60_s24 = sadd.s32 1, %s415_s24  }
  0x36   : >> { %s65_s27 = sld [smem:[#allocation4 + %s64_s26]]  ;;  %p57_p5 = scmp.ge.s32.totalorder %s60_s24, 8  }
  0x37   : > { %s69_s2 = scalar_lea.vmem (%p57_p5), [#allocation2], %s407_s23  ;;  %s54_s23 = sadd.s32 (%p57_p5), 1, %s407_s23  }
  0x38   : > { %p51_p6 = scmp.ge.s32.totalorder (%p57_p5), %s54_s23, 8  }
  0x3a   : > { %59 = sbr.rel (!%p57_p5) target bundleno = 52 (0x34), region = 56 }
  0x3c   : >> { %s66_s28 = scalar_lea.vmem [#allocation5], %s65_s27 }
  0x3d   : >> { %v67_v1 = vld [vmem:[%s66_s28] sm:$0x1] }
  0x3e   : >> { %v68_v2 = vadd.f32 %v411_v0, %v67_v1  }
  0x40   : >> { %v410_v0 = vmov %v68_v2   ;;  %70 = vst [vmem:[%s69_s2] sm:$0x1] (%p57_p5), %v68_v2 }
  0x41   :  { %53 = sbr.rel (!%p51_p6) target bundleno = 51 (0x33), region = 67  ;;  %v73_v3 = vld [vmem:[#allocation8] sm:$0xff] (%p51_p6)  ;;  %v74_v4 = vld [vmem:[#allocation8 + $0x8] sm:$0xff] (%p51_p6)  ;;  %v75_v5 = vld [vmem:[#allocation8 + $0x10] sm:$0xff] (%p51_p6)  ;;  %v422_v6 = vmov (%p51_p6), 0.0|0.0   ;;  %vm423_vm0 = vmmov (%p51_p6), 0  }
  0x42   :  { %252 = vmatprep.subr.bf16.mxu0 (%p51_p6), %v422_v6  ;;  %v253_v7 = vpack.c.bf16 (%p51_p6), %v74_v4, %v73_v3  ;;  %v76_v8 = vld [vmem:[#allocation8 + $0x18] sm:$0xff] (%p51_p6)  ;;  %v424_v9 = vmov (%p51_p6), 0.0   ;;  %v77_v11 = vld [vmem:[#allocation8 + $0x20] sm:$0xff] (%p51_p6)  ;;  %v78_v12 = vld [vmem:[#allocation8 + $0x28] sm:$0xff] (%p51_p6)  ;;  %s425_s5 = smov (%p51_p6), [#allocation10]  }
  0x43   :  { %249 = vmatprep.mubr.msk.f32.mxu0 (%p51_p6), %vm423_vm0, %v424_v9  ;;  %v256_v10 = vpack.c.bf16 (%p51_p6), %v76_v8, %v75_v5  ;;  %v259_v13 = vpack.c.bf16 (%p51_p6), %v78_v12, %v77_v11  ;;  %v79_v14 = vld [vmem:[#allocation8 + $0x30] sm:$0xff] (%p51_p6)  ;;  %v80_v15 = vld [vmem:[#allocation8 + $0x38] sm:$0xff] (%p51_p6)  ;;  %v81_v17 = vld [vmem:[#allocation8 + $0x40] sm:$0xff] (%p51_p6)  ;;  %s173_s6 = sshll.u32 (%p51_p6), %s425_s5, 4  ;;  %s174_s6 = int_to_ptr.vmem [resolvable:$true] %s173_s6 }
  0x44   :  { %254 = vmatpush3.bf16.msra.mxu0 (%p51_p6), %v253_v7  ;;  %v262_v16 = vpack.c.bf16 (%p51_p6), %v80_v15, %v79_v14  ;;  %v82_v18 = vld [vmem:[#allocation8 + $0x48] sm:$0xff] (%p51_p6)  ;;  %v83_v20 = vld [vmem:[#allocation8 + $0x50] sm:$0xff] (%p51_p6)  ;;  %v84_v21 = vld [vmem:[#allocation8 + $0x58] sm:$0xff] (%p51_p6)  ;;  %s363_s7 = scalar_lea.vmem (%p51_p6), %s174_s6, 128  ;;  %p368_p8 = scmp.lt.s32.totalorder (%p51_p6), %s174_s6, %s174_s6 }
  0x45   :  { %255 = vmatprep.subr.bf16.mxu0 (%p51_p6), %v422_v6  ;;  %v265_v19 = vpack.c.bf16 (%p51_p6), %v82_v18, %v81_v17  ;;  %v268_v22 = vpack.c.bf16 (%p51_p6), %v84_v21, %v83_v20  ;;  %v85_v23 = vld [vmem:[#allocation8 + $0x60] sm:$0xff] (%p51_p6)  ;;  %v86_v24 = vld [vmem:[#allocation8 + $0x68] sm:$0xff] (%p51_p6)  ;;  %v87_v26 = vld [vmem:[#allocation8 + $0x70] sm:$0xff] (%p51_p6)  ;;  %p364_p7 = scmp.ne.s32.totalorder (%p51_p6), %s174_s6, %s363_s7  ;;  %p369_p9 = scmp.lt.s32.totalorder (%p51_p6), %s363_s7, %s363_s7 }
  0x46   :  { %v271_v25 = vpack.c.bf16 (%p51_p6), %v86_v24, %v85_v23  ;;  %v88_v27 = vld [vmem:[#allocation8 + $0x78] sm:$0xff] (%p51_p6) }
  0x47   :  { %v274_v28 = vpack.c.bf16 (%p51_p6), %v88_v27, %v87_v26  ;;  %v71_v29 = vld [vmem:[#allocation2] sm:$0xff] (%p51_p6)  ;;  %p370_p10 = por (%p51_p6), %p369_p9, %p368_p8 }
  0x48   :  { %257 = vmatpush3.bf16.msra.mxu0 %v256_v10  ;;  %v72_v30 = vmul.f32 0.125, %v71_v29  ;;  %v199_v31 = vld [vmem:[%s505_s3] ss:$0 sm:$0xff] }
  0x49   :  { %258 = vmatprep.subr.bf16.mxu0 %v422_v6  ;;  %p371_p11 = pnand %p370_p10, %p364_p7 }
  0x4c   :  { %260 = vmatpush3.bf16.msra.mxu0 %v259_v13 }
  0x4d   :  { %261 = vmatprep.subr.bf16.mxu0 %v422_v6 }
  0x50   :  { %263 = vmatpush3.bf16.msra.mxu0 %v262_v16 }
  0x51   :  { %264 = vmatprep.subr.bf16.mxu0 %v422_v6 }
  0x54   :  { %266 = vmatpush3.bf16.msra.mxu0 %v265_v19 }
  0x55   :  { %267 = vmatprep.subr.bf16.mxu0 %v422_v6 }
  0x58   :  { %269 = vmatpush3.bf16.msra.mxu0 %v268_v22 }
  0x59   :  { %270 = vmatprep.subr.bf16.mxu0 %v422_v6 }
  0x5c   :  { %272 = vmatpush3.bf16.msra.mxu0 %v271_v25 }
  0x5d   :  { %273 = vmatprep.subr.bf16.mxu0 %v422_v6 }
  0x60   :  { %275 = vmatpush3.bf16.msra.mxu0 %v274_v28 }
  0x63   :  { %250 = vmatmul.mubr.f32.vlgmr.msra.gmra.mrb[0].mxu0 %v72_v30 }
 0x136   :  { %v162_v32 = vpop.f32.mrb[0].mxu0 }
 0x137   :  { %v163_v33 = vadd.f32 %v199_v31, %v162_v32  ;;  %v251_v34 = vpop.f32.mrb[1].mxu0 }
 0x139   :  { %166 = vst [vmem:[#allocation10] sm:$0xff] %v163_v33 }
 0x13a   :  { %374 = shalt.err (!%p371_p11)
}
 0x13b   :  { %s375_s9 = scalar_lea.hbm %s506_s4, 128 }
 0x13c   :  { %p376_p12 = scmp.ne.s32.totalorder %s506_s4, %s375_s9  ;;  %p379_p13 = scmp.lt.u32.totalorder %s375_s9, %s506_s4 }
 0x13e   :  { %p381_p0 = pnand %p379_p13, %p376_p12 }
 0x140   :  { %384 = shalt.err (!%p381_p0)
}
 0x141   :  { %176 = dma.vmem_to_hbm [thread:$0]  %s174_s6, 128, %s506_s4, [#allocation7]  }
 0x142   :  { %403 = dma.done.wait [#allocation7], 128  }
 0x143   :  { %404 = vsyncadd [#allocation7], 4294967168 }
 0x144   :  { %180 = vsyncpa [#allocation6], 1 }
 0x145   :  { %181 = vsyncpa [#allocation9], 1 }
 0x146   :  { %182 = vsyncpa [#allocation7], 1 }

</bundles_post_ra>
